<compile_context>
chip_gen: v6e
topology: v6e:2x2x1
jax: 0.10.0
libtpu: 0.0.40
codegen_flags: <defaults>
</compile_context>

<pallas_src>
import functools

import jax
import jax.numpy as jnp
from jax import lax
from jax.experimental import pallas as pl
from jax.experimental.pallas import tpu as pltpu

EPS = 1e-5
MOMENTUM = 0.9

TARGET_BLOCK_BYTES = 2 * 1024 * 1024   # per-grid-step x block (streaming path)
FUSED_SLAB_BYTES = 2 * 1024 * 1024     # f32 working slab per fused channel block
VMEM_LIMIT_BYTES = 32 * 1024 * 1024    # safe on v5e / v6e / v7x


# ----------------------------------------------------------------------------
# Tile-size helpers (all trace-time Python on static shapes)
# ----------------------------------------------------------------------------
def _divisor_multiple(dim, align, target):
    """Largest divisor of `dim` that is a multiple of `align` and <= max(align, target).
    Returns None when `dim` is not a multiple of `align`."""
    if dim % align != 0:
        return None
    best = align
    t = align
    limit = min(dim, max(align, target))
    while t <= limit:
        if dim % t == 0:
            best = t
        t += align
    return best


def _largest_divisor_leq(dim, cap):
    best = 1
    for t in range(1, min(dim, max(1, cap)) + 1):
        if dim % t == 0:
            best = t
    return best


def _choose_fused_cblk(N, C, HW, align_c):
    """Largest channel block such that the fused (N, c_blk, HW) f32 slab fits."""
    per_c = N * HW * 4  # f32 working bytes per channel
    if per_c <= 0:
        return None
    if C % align_c != 0:
        return C if C * per_c <= FUSED_SLAB_BYTES else None
    best = None
    c = align_c
    while c <= C:
        if C % c == 0 and c * per_c <= FUSED_SLAB_BYTES:
            best = c
        c += align_c
    return best


# ----------------------------------------------------------------------------
# Kernels
# ----------------------------------------------------------------------------
def _bn_fused_kernel(x_ref, gamma_ref, beta_ref, y_ref, mean_ref, var_ref):
    # x_ref: (N, c_blk, HW) — the entire reduction for this channel block is
    # resident in VMEM: one HBM read + one HBM write of x total, and we can use
    # the numerically stable centered variance.
    x = x_ref[...].astype(jnp.float32)
    inv_r = jnp.float32(1.0 / (x.shape[0] * x.shape[2]))
    mean = jnp.sum(jnp.sum(x, axis=2, keepdims=True), axis=0, keepdims=True) * inv_r
    centered = x - mean
    var = jnp.sum(jnp.sum(centered * centered, axis=2, keepdims=True),
                  axis=0, keepdims=True) * inv_r
    inv_std = lax.rsqrt(var + jnp.float32(EPS))
    c_blk = gamma_ref.shape[0]
    scale = gamma_ref[...].reshape(1, c_blk, 1) * inv_std
    shift = beta_ref[...].reshape(1, c_blk, 1)
    y_ref[...] = (centered * scale + shift).astype(y_ref.dtype)
    mean_ref[...] = mean.reshape(mean_ref.shape)
    var_ref[...] = var.reshape(var_ref.shape)


def _bn_stats_kernel(x_ref, sum_ref, sumsq_ref):
    # x_ref: (n_blk, c_blk, hw_tile); sum/sumsq refs: (c_blk, 1) f32 accumulators
    # resident across the reduction grid axes (2: N-blocks, 3: HW-tiles).
    no = pl.program_id(2)
    hi = pl.program_id(3)

    @pl.when(jnp.logical_and(no == 0, hi == 0))
    def _():
        sum_ref[...] = jnp.zeros_like(sum_ref)
        sumsq_ref[...] = jnp.zeros_like(sumsq_ref)

    x = x_ref[...].astype(jnp.float32)                       # one cast per tile
    sum_ref[...] += jnp.sum(jnp.sum(x, axis=2, keepdims=True), axis=0)
    sumsq_ref[...] += jnp.sum(jnp.sum(x * x, axis=2, keepdims=True), axis=0)


def _bn_apply_kernel(x_ref, scale_ref, shift_ref, y_ref):
    # Per-channel scale/shift precomputed -> a single fused mul+add per element.
    c_blk = scale_ref.shape[0]
    scale = scale_ref[...].reshape(1, c_blk, 1)
    shift = shift_ref[...].reshape(1, c_blk, 1)
    x = x_ref[...].astype(scale.dtype)   # no-op for f32; bf16 stays bf16
    y_ref[...] = (x * scale + shift).astype(y_ref.dtype)


# ----------------------------------------------------------------------------
# Wrapper
# ----------------------------------------------------------------------------
@functools.partial(jax.jit, static_argnames=("force_two_pass",))
def batch_norm_pallas(x_nchw, gamma, beta, moving_mean, moving_var, *,
                      force_two_pass=False):
    """x_nchw: (N, C, H, W); gamma/beta/moving_*: (1, C, 1, 1).

    Returns (Y, new_moving_mean, new_moving_var) matching the grad-enabled
    (training) branch of the PyTorch `batch_norm`.
    """
    N, C, H, W = x_nchw.shape
    HW = H * W
    R = N * HW
    itemsize = jnp.dtype(x_nchw.dtype).itemsize
    align_c = max(8, 32 // itemsize)     # sublane packing: 8 f32, 16 bf16, 32 int8

    # Free, contiguous reshape: NCHW -> (N, C, HW).  HW lands on the lane axis.
    x3d = x_nchw.reshape(N, C, HW)
    g = gamma.reshape(C, 1).astype(jnp.float32)
    b = beta.reshape(C, 1).astype(jnp.float32)
    mm = moving_mean.reshape(C, 1).astype(jnp.float32)
    mv = moving_var.reshape(C, 1).astype(jnp.float32)

    fused_cblk = None if force_two_pass else _choose_fused_cblk(N, C, HW, align_c)

    if fused_cblk is not None:
        # ------------------ Fused single pass: 2x|x| HBM traffic -------------
        c_blk = fused_cblk
        y3d, mean, var = pl.pallas_call(
            _bn_fused_kernel,
            out_shape=(
                jax.ShapeDtypeStruct((N, C, HW), x_nchw.dtype),
                jax.ShapeDtypeStruct((C, 1), jnp.float32),
                jax.ShapeDtypeStruct((C, 1), jnp.float32),
            ),
            grid_spec=pltpu.PrefetchScalarGridSpec(
                num_scalar_prefetch=0,
                grid=(C // c_blk,),
                in_specs=[
                    pl.BlockSpec((N, c_blk, HW), lambda ci: (0, ci, 0)),
                    pl.BlockSpec((c_blk, 1), lambda ci: (ci, 0)),
                    pl.BlockSpec((c_blk, 1), lambda ci: (ci, 0)),
                ],
                out_specs=(
                    pl.BlockSpec((N, c_blk, HW), lambda ci: (0, ci, 0)),
                    pl.BlockSpec((c_blk, 1), lambda ci: (ci, 0)),
                    pl.BlockSpec((c_blk, 1), lambda ci: (ci, 0)),
                ),
            ),
            compiler_params=pltpu.CompilerParams(
                dimension_semantics=("parallel",),
                vmem_limit_bytes=VMEM_LIMIT_BYTES),
        )(x3d, g, b)
    else:
        # ------------------ Streaming two-pass fallback -----------------------
        c_blk = _divisor_multiple(C, align_c, 64)
        if c_blk is None:
            c_blk = C   # full-dim fallback (allowed when block == full array dim)

        if HW % 128 == 0:
            hw_target = max(
                128, (TARGET_BLOCK_BYTES // max(1, c_blk * itemsize)) // 128 * 128)
            hw_tile = _divisor_multiple(HW, 128, hw_target)
        else:
            # Non-128-multiple HW: keep a full-HW lane axis (still lane-dense as a
            # full-dim block) and bound block bytes by shrinking the channel block.
            hw_tile = HW
            while (C % align_c == 0 and c_blk > align_c
                   and c_blk * HW * itemsize > 2 * TARGET_BLOCK_BYTES):
                cand = _divisor_multiple(C, align_c, c_blk // 2)
                if cand is None or cand >= c_blk:
                    break
                c_blk = cand
            # TODO(synk): for huge HW not divisible by 128, pad HW to a multiple of
            # 128 in the wrapper instead of using one oversized full-HW block.

        block_bytes = c_blk * hw_tile * itemsize
        n_cap = max(1, TARGET_BLOCK_BYTES // max(1, block_bytes))
        if (C // c_blk) == 1 and N % 2 == 0 and N >= 2:
            n_cap = min(n_cap, N // 2)   # keep >=2 N-blocks so stats can 2-TC split
        n_blk = _largest_divisor_leq(N, n_cap)
        NB = N // n_blk
        S = 2 if ((C // c_blk) == 1 and NB >= 2 and NB % 2 == 0) else 1
        nb_per_split = NB // S

        # ---- Pass 1: per-channel partial sums / sums-of-squares ------------
        x_stats_spec = pl.BlockSpec(
            (n_blk, c_blk, hw_tile),
            lambda si, ci, no, hi: (si * nb_per_split + no, ci, hi))
        psum_spec = pl.BlockSpec((None, c_blk, 1),
                                 lambda si, ci, no, hi: (si, ci, 0))

        psums, psumsqs = pl.pallas_call(
            _bn_stats_kernel,
            out_shape=(
                jax.ShapeDtypeStruct((S, C, 1), jnp.float32),
                jax.ShapeDtypeStruct((S, C, 1), jnp.float32),
            ),
            grid_spec=pltpu.PrefetchScalarGridSpec(
                num_scalar_prefetch=0,
                grid=(S, C // c_blk, nb_per_split, HW // hw_tile),
                in_specs=[x_stats_spec],
                out_specs=(psum_spec, psum_spec),
            ),
            compiler_params=pltpu.CompilerParams(
                dimension_semantics=("parallel", "parallel", "arbitrary", "arbitrary"),
                vmem_limit_bytes=VMEM_LIMIT_BYTES),
        )(x3d)

        sums = jnp.sum(psums, axis=0)       # (C, 1)
        sumsqs = jnp.sum(psumsqs, axis=0)   # (C, 1)
        inv_r = jnp.float32(1.0 / R)
        mean = sums * inv_r
        var = jnp.maximum(sumsqs * inv_r - mean * mean, 0.0)   # biased, like ref

        # ---- Tiny per-channel math + Pass 2: y = x*scale + shift -----------
        inv_std = lax.rsqrt(var + jnp.float32(EPS))
        scale = g * inv_std
        shift = b - mean * scale
        apply_dtype = x_nchw.dtype if x_nchw.dtype == jnp.bfloat16 else jnp.float32
        scale_a = scale.astype(apply_dtype)
        shift_a = shift.astype(apply_dtype)

        y3d = pl.pallas_call(
            _bn_apply_kernel,
            out_shape=jax.ShapeDtypeStruct((N, C, HW), x_nchw.dtype),
            grid_spec=pltpu.PrefetchScalarGridSpec(
                num_scalar_prefetch=0,
                grid=(C // c_blk, NB, HW // hw_tile),
                in_specs=[
                    pl.BlockSpec((n_blk, c_blk, hw_tile),
                                 lambda ci, ni, hi: (ni, ci, hi)),
                    pl.BlockSpec((c_blk, 1), lambda ci, ni, hi: (ci, 0)),
                    pl.BlockSpec((c_blk, 1), lambda ci, ni, hi: (ci, 0)),
                ],
                out_specs=pl.BlockSpec((n_blk, c_blk, hw_tile),
                                       lambda ci, ni, hi: (ni, ci, hi)),
            ),
            compiler_params=pltpu.CompilerParams(
                dimension_semantics=("parallel", "parallel", "parallel"),
                vmem_limit_bytes=VMEM_LIMIT_BYTES),
        )(x3d, scale_a, shift_a)

    new_mm = MOMENTUM * mm + (1.0 - MOMENTUM) * mean
    new_mv = MOMENTUM * mv + (1.0 - MOMENTUM) * var

    y = y3d.reshape(N, C, H, W)
    return y, new_mm.reshape(1, C, 1, 1), new_mv.reshape(1, C, 1, 1)


class BatchNormPallas:
    """Mirrors BatchNorm(num_features, num_dims=4) — training-mode forward."""

    def __init__(self, num_features):
        shape = (1, num_features, 1, 1)
        self.gamma = jnp.ones(shape, jnp.float32)
        self.beta = jnp.zeros(shape, jnp.float32)
        self.moving_mean = jnp.zeros(shape, jnp.float32)
        self.moving_var = jnp.ones(shape, jnp.float32)

    def __call__(self, x):
        y, self.moving_mean, self.moving_var = batch_norm_pallas(
            x, self.gamma, self.beta, self.moving_mean, self.moving_var)
        return y


def _reference(x, gamma, beta, moving_mean, moving_var):
    mean = jnp.mean(x, axis=(0, 2, 3), keepdims=True)
    var = jnp.mean((x - mean) ** 2, axis=(0, 2, 3), keepdims=True)
    x_hat = (x - mean) / jnp.sqrt(var + EPS)
    y = gamma * x_hat + beta
    new_mm = MOMENTUM * moving_mean + (1.0 - MOMENTUM) * mean
    new_mv = MOMENTUM * moving_var + (1.0 - MOMENTUM) * var
    return y, new_mm, new_mv


if __name__ == "__main__":
    key = jax.random.PRNGKey(0)
    N, C, H, W = 2, 4, 16, 16
    x = jax.random.normal(key, (N, C, H, W), dtype=jnp.float32)

    bn = BatchNormPallas(num_features=C)
    g0, b0, mm0, mv0 = bn.gamma, bn.beta, bn.moving_mean, bn.moving_var

    # Fused single-pass path (small x -> fits the per-block VMEM budget).
    y = bn(x)
    jax.block_until_ready(y)
    jax.block_until_ready(bn.moving_mean)
    jax.block_until_ready(bn.moving_var)

    y_ref, mm_ref, mv_ref = _reference(x, g0, b0, mm0, mv0)
    assert jnp.allclose(y, y_ref, atol=2e-5, rtol=2e-5)
    assert jnp.allclose(bn.moving_mean, mm_ref, atol=1e-5, rtol=1e-5)
    assert jnp.allclose(bn.moving_var, mv_ref, atol=1e-5, rtol=1e-5)

    # Also exercise the streaming two-pass (large-tensor) path at a small shape.
    y2, mm2, mv2 = batch_norm_pallas(x, g0, b0, mm0, mv0, force_two_pass=True)
    jax.block_until_ready(y2)
    assert jnp.allclose(y2, y_ref, atol=2e-5, rtol=2e-5)
    assert jnp.allclose(mm2, mm_ref, atol=1e-5, rtol=1e-5)
    assert jnp.allclose(mv2, mv_ref, atol=1e-5, rtol=1e-5)

    print("KERNEL_OK")
</pallas_src>

<mosaic_0001>
module attributes {stable_mosaic.version = 11 : i64} {
  func.func @_bn_fused_kernel(%arg0: i32, %arg1: memref<2x4x256xf32, #tpu.memory_space<vmem>>, %arg2: memref<4x1xf32, #tpu.memory_space<vmem>>, %arg3: memref<4x1xf32, #tpu.memory_space<vmem>>, %arg4: memref<2x4x256xf32, #tpu.memory_space<vmem>>, %arg5: memref<4x1xf32, #tpu.memory_space<vmem>>, %arg6: memref<4x1xf32, #tpu.memory_space<vmem>>) attributes {dimension_semantics = [#tpu.dimension_semantics<parallel>], iteration_bounds = array<i64: 1>, scalar_prefetch = 0 : i64, scratch_operands = 0 : i64, tpu.core_type = #tpu.core_type<tc>, window_params = [{transform_indices = @transform_0, window_bounds = array<i64: 2, 4, 256>}, {transform_indices = @transform_1, window_bounds = array<i64: 4, 1>}, {transform_indices = @transform_2, window_bounds = array<i64: 4, 1>}, {transform_indices = @transform_3, window_bounds = array<i64: 2, 4, 256>}, {transform_indices = @transform_4, window_bounds = array<i64: 4, 1>}, {transform_indices = @transform_5, window_bounds = array<i64: 4, 1>}]} {
    %c0 = arith.constant 0 : index
    %c0_0 = arith.constant 0 : index
    %c0_1 = arith.constant 0 : index
    %0 = vector.load %arg1[%c0, %c0_0, %c0_1] : memref<2x4x256xf32, #tpu.memory_space<vmem>>, vector<2x4x256xf32>
    %cst = arith.constant dense<0.000000e+00> : vector<2x4xf32>
    %1 = vector.multi_reduction <add>, %0, %cst [2] : vector<2x4x256xf32> to vector<2x4xf32>
    %2 = vector.shape_cast %1 : vector<2x4xf32> to vector<2x4x1xf32>
    %cst_2 = arith.constant dense<0.000000e+00> : vector<4x1xf32>
    %3 = vector.multi_reduction <add>, %2, %cst_2 [0] : vector<2x4x1xf32> to vector<4x1xf32>
    %4 = vector.shape_cast %3 : vector<4x1xf32> to vector<1x4x1xf32>
    %cst_3 = arith.constant 0.001953125 : f32
    %5 = vector.broadcast %cst_3 : f32 to vector<1x4x1xf32>
    %6 = arith.mulf %4, %5 : vector<1x4x1xf32>
    %7 = vector.broadcast %6 : vector<1x4x1xf32> to vector<2x4x256xf32>
    %8 = arith.subf %0, %7 : vector<2x4x256xf32>
    %9 = arith.mulf %8, %8 : vector<2x4x256xf32>
    %cst_4 = arith.constant dense<0.000000e+00> : vector<2x4xf32>
    %10 = vector.multi_reduction <add>, %9, %cst_4 [2] : vector<2x4x256xf32> to vector<2x4xf32>
    %11 = vector.shape_cast %10 : vector<2x4xf32> to vector<2x4x1xf32>
    %cst_5 = arith.constant dense<0.000000e+00> : vector<4x1xf32>
    %12 = vector.multi_reduction <add>, %11, %cst_5 [0] : vector<2x4x1xf32> to vector<4x1xf32>
    %13 = vector.shape_cast %12 : vector<4x1xf32> to vector<1x4x1xf32>
    %cst_6 = arith.constant 0.001953125 : f32
    %14 = vector.broadcast %cst_6 : f32 to vector<1x4x1xf32>
    %15 = arith.mulf %13, %14 : vector<1x4x1xf32>
    %cst_7 = arith.constant 9.99999974E-6 : f32
    %16 = vector.broadcast %cst_7 : f32 to vector<1x4x1xf32>
    %17 = arith.addf %15, %16 : vector<1x4x1xf32>
    %18 = math.rsqrt %17 : vector<1x4x1xf32>
    %c0_8 = arith.constant 0 : index
    %c0_9 = arith.constant 0 : index
    %19 = vector.load %arg2[%c0_8, %c0_9] : memref<4x1xf32, #tpu.memory_space<vmem>>, vector<4x1xf32>
    %20 = vector.shape_cast %19 : vector<4x1xf32> to vector<1x4x1xf32>
    %21 = arith.mulf %20, %18 : vector<1x4x1xf32>
    %c0_10 = arith.constant 0 : index
    %c0_11 = arith.constant 0 : index
    %22 = vector.load %arg3[%c0_10, %c0_11] : memref<4x1xf32, #tpu.memory_space<vmem>>, vector<4x1xf32>
    %23 = vector.shape_cast %22 : vector<4x1xf32> to vector<1x4x1xf32>
    %24 = vector.broadcast %21 : vector<1x4x1xf32> to vector<2x4x256xf32>
    %25 = arith.mulf %8, %24 : vector<2x4x256xf32>
    %26 = vector.broadcast %23 : vector<1x4x1xf32> to vector<2x4x256xf32>
    %27 = arith.addf %25, %26 : vector<2x4x256xf32>
    %c0_12 = arith.constant 0 : index
    %c0_13 = arith.constant 0 : index
    %c0_14 = arith.constant 0 : index
    %28 = vector.load %arg4[%c0_12, %c0_13, %c0_14] : memref<2x4x256xf32, #tpu.memory_space<vmem>>, vector<2x4x256xf32>
    tpu.vector_store %arg4[%c0_12, %c0_13, %c0_14], %27 {strides = array<i32>} : memref<2x4x256xf32, #tpu.memory_space<vmem>>, vector<2x4x256xf32>,
    %29 = vector.shape_cast %6 : vector<1x4x1xf32> to vector<4x1xf32>
    %c0_15 = arith.constant 0 : index
    %c0_16 = arith.constant 0 : index
    %30 = vector.load %arg5[%c0_15, %c0_16] : memref<4x1xf32, #tpu.memory_space<vmem>>, vector<4x1xf32>
    tpu.vector_store %arg5[%c0_15, %c0_16], %29 {strides = array<i32>} : memref<4x1xf32, #tpu.memory_space<vmem>>, vector<4x1xf32>,
    %31 = vector.shape_cast %15 : vector<1x4x1xf32> to vector<4x1xf32>
    %c0_17 = arith.constant 0 : index
    %c0_18 = arith.constant 0 : index
    %32 = vector.load %arg6[%c0_17, %c0_18] : memref<4x1xf32, #tpu.memory_space<vmem>>, vector<4x1xf32>
    tpu.vector_store %arg6[%c0_17, %c0_18], %31 {strides = array<i32>} : memref<4x1xf32, #tpu.memory_space<vmem>>, vector<4x1xf32>,
    return
  }
  func.func @transform_0(%arg0: i32) -> (i32, i32, i32) {
    %c0_i32 = arith.constant 0 : i32
    %c0_i32_0 = arith.constant 0 : i32
    %c0_i32_1 = arith.constant 0 : i32
    return %c0_i32, %arg0, %c0_i32_0 : i32, i32, i32
  }
  func.func @transform_1(%arg0: i32) -> (i32, i32) {
    %c0_i32 = arith.constant 0 : i32
    %c0_i32_0 = arith.constant 0 : i32
    return %arg0, %c0_i32 : i32, i32
  }
  func.func @transform_2(%arg0: i32) -> (i32, i32) {
    %c0_i32 = arith.constant 0 : i32
    %c0_i32_0 = arith.constant 0 : i32
    return %arg0, %c0_i32 : i32, i32
  }
  func.func @transform_3(%arg0: i32) -> (i32, i32, i32) {
    %c0_i32 = arith.constant 0 : i32
    %c0_i32_0 = arith.constant 0 : i32
    %c0_i32_1 = arith.constant 0 : i32
    return %c0_i32, %arg0, %c0_i32_0 : i32, i32, i32
  }
  func.func @transform_4(%arg0: i32) -> (i32, i32) {
    %c0_i32 = arith.constant 0 : i32
    %c0_i32_0 = arith.constant 0 : i32
    return %arg0, %c0_i32 : i32, i32
  }
  func.func @transform_5(%arg0: i32) -> (i32, i32) {
    %c0_i32 = arith.constant 0 : i32
    %c0_i32_0 = arith.constant 0 : i32
    return %arg0, %c0_i32 : i32, i32
  }
}

</mosaic_0001>

<bundles_post_ra>
// kernel: batch_norm_pallas.1
= control target key start
LH: loop header
LB: loop body
LE: loop exit
PB: predicated region body
PF: predicated region fallthrough
CT: control target
= control target key end

     0   :  { %vm25_vm0 = vcmask 1043456   ;;  %v131_v10 = vmov 839922192   ;;  %v44_v12 = vlaneseq  ;;  %vm108_vm1 = vcmask 3072   ;;  %s201_s0 = inlined_call_operand.vmem [shape: f32[2,4,256], index: 0, kind: input, shape index: {}]   ;;  %s202_s4 = inlined_call_operand.vmem [shape: f32[4,1], index: 4, kind: output, shape index: {1}]   ;;  %s203_s2 = inlined_call_operand.vmem [shape: f32[4,1], index: 2, kind: input, shape index: {}]   ;;  %s204_s5 = inlined_call_operand.vmem [shape: f32[4,1], index: 5, kind: output, shape index: {2}]   ;;  %s205_s1 = inlined_call_operand.vmem [shape: f32[4,1], index: 1, kind: input, shape index: {}]   ;;  %s206_s3 = inlined_call_operand.vmem [shape: f32[2,4,256], index: 3, kind: output, shape index: {0}]  }
   0x1   :  { %v17_v0 = vld [vmem:[%s201_s0] sm:$0xff]  ;;  %v18_v1 = vld [vmem:[%s201_s0 + $0x8] sm:$0xff]  ;;  %v42_v11 = vunpack.c.l.s4 %v131_v10  ;;  %v132_v35 = vmov 0  }
   0x2   :  { %v21_v2 = vcombine.high %v17_v0, %v17_v0  ;;  %v26_v3 = vsel %vm25_vm0, %v17_v0, 0.0  ;;  %v22_v4 = vcombine.high %v18_v1, %v18_v1  ;;  %v31_v6 = vsel %vm25_vm0, %v18_v1, 0.0  ;;  %125 = vset.pattern.permute.xlu0 %v132_v35  ;;  %126 = vset.pattern.permute.xlu1 %v132_v35  ;;  %v77_v36 = vld [vmem:[%s203_s2] sm:$0xf] }
   0x3   :  { %v43_v14 = vunpack.c.0.s8 %v42_v11  ;;  %v45_v15 = vshrl.u32 %v44_v12, 7  ;;  %v75_v44 = vld [vmem:[%s205_s1] sm:$0xf] }
   0x4   :  { %v27_v5 = vsel %vm25_vm0, %v21_v2, 0.0  ;;  %v32_v7 = vsel %vm25_vm0, %v22_v4, 0.0 }
   0x5   :  { %v28_v8 = vadd.f32 %v27_v5, %v26_v3  ;;  %v33_v9 = vadd.f32 %v32_v7, %v31_v6  ;;  %v46_v19 = vsub.s32 %v43_v14, %v45_v15 }
   0x7   :  { %29 = vadd.xlane.f32.xlu0 %v28_v8 }
   0xb   :  { %34 = vadd.xlane.f32.xlu0 %v33_v9 }
  0x90   :  { %v30_v13 = vpop.xlane.xlu0 %29 }
  0x91   :  { %v36_v17 = vsel %vm25_vm0, %v30_v13, 0.0 }
  0x94   :  { %v35_v16 = vpop.xlane.xlu0 %34 }
  0x95   :  { %v37_v18 = vsel %vm25_vm0, %v35_v16, 0.0 }
  0x96   :  { %v38_v20 = vadd.f32 %v37_v18, %v36_v17 }
  0x98   :  { %v39_v21 = vmul.f32 0.001953125, %v38_v20 }
  0x9a   :  { %v47_v22 = vrot.slane %v39_v21, %v46_v19  ;;  %109 = vst.msk [vmem:[%s202_s4] sm:$0xf] %vm108_vm1, %v39_v21 }
  0x9c   :  { %v50_v23 = vsub.f32 %v18_v1, %v47_v22  ;;  %v49_v24 = vsub.f32 %v17_v0, %v47_v22 }
  0x9e   :  { %v51_v25 = vmul.f32 %v49_v24, %v49_v24  ;;  %v52_v26 = vmul.f32 %v50_v23, %v50_v23 }
  0xa0   :  { %v55_v27 = vcombine.high %v51_v25, %v51_v25  ;;  %v56_v28 = vcombine.high %v52_v26, %v52_v26  ;;  %v59_v29 = vsel %vm25_vm0, %v51_v25, 0.0  ;;  %v64_v33 = vsel %vm25_vm0, %v52_v26, 0.0 }
  0xa2   :  { %v60_v30 = vsel %vm25_vm0, %v55_v27, 0.0  ;;  %v65_v32 = vsel %vm25_vm0, %v56_v28, 0.0 }
  0xa3   :  { %v61_v31 = vadd.f32 %v60_v30, %v59_v29  ;;  %v66_v34 = vadd.f32 %v65_v32, %v64_v33 }
  0xa5   :  { %62 = vadd.xlane.f32.xlu1 %v61_v31 }
  0xa9   :  { %67 = vadd.xlane.f32.xlu1 %v66_v34 }
  0xba   :  { %94 = vperm.xlu1 %126, %v77_v36  }
 0x12e   :  { %v63_v37 = vpop.xlane.xlu1 %62 }
 0x12f   :  { %v69_v39 = vsel %vm25_vm0, %v63_v37, 0.0 }
 0x132   :  { %v68_v38 = vpop.xlane.xlu1 %67 }
 0x133   :  { %v70_v40 = vsel %vm25_vm0, %v68_v38, 0.0 }
 0x134   :  { %v71_v41 = vadd.f32 %v70_v40, %v69_v39 }
 0x136   :  { %v72_v42 = vmul.f32 0.001953125, %v71_v41  ;;  %v95_v47 = vpop.permute.xlu1 %94 }
 0x137   :  { %v102_v50 = vrot.slane %v95_v47, %v46_v19 }
 0x138   :  { %v73_v43 = vadd.f32 1e-05, %v72_v42  ;;  %110 = vst.msk [vmem:[%s204_s5] sm:$0xf] %vm108_vm1, %v72_v42 }
 0x13a   :  { %129 = vrsqrt.f32 %v73_v43 }
 0x147   :  { %v130_v45 = vpop.eup %129 }
 0x148   :  { %v76_v46 = vmul.f32 %v130_v45, %v75_v44 }
 0x14a   :  { %80 = vperm.xlu0 %125, %v76_v46  }
 0x1c5   :  { %v81_v48 = vpop.permute.xlu0 %80 }
 0x1c6   :  { %v88_v49 = vrot.slane %v81_v48, %v46_v19 }
 0x1c8   :  { %v90_v51 = vmul.f32 %v88_v49, %v49_v24  ;;  %v91_v52 = vmul.f32 %v88_v49, %v50_v23 }
 0x1ca   :  { %v104_v53 = vadd.f32 %v102_v50, %v90_v51  ;;  %v105_v54 = vadd.f32 %v102_v50, %v91_v52 }
 0x1cc   :  { %106 = vst [vmem:[%s206_s3] sm:$0xff] %v104_v53  ;;  %107 = vst [vmem:[%s206_s3 + $0x8] sm:$0xff] %v105_v54 }

</bundles_post_ra>
